<compile_context>
chip_gen: v5e
topology: v5e:2x2
jax: 0.10.0
libtpu: 0.0.40
codegen_flags: <defaults>
</compile_context>

<pallas_src>
import jax
import jax.numpy as jnp
from jax.experimental import pallas as pl
from jax.experimental.pallas import tpu as pltpu


def _epdm_kernel(x_ref, w1_ref, b1_ref, w2_ref, b2_ref, w3_ref, b3_ref, o_ref):
    # Layer 1: single fused matmul over the concatenated (state|action) input,
    # bias + ReLU in f32 on the VPU, then bf16 for the next MXU pass.
    h1 = jnp.dot(x_ref[...], w1_ref[...], preferred_element_type=jnp.float32)
    h1 = jnp.maximum(h1 + b1_ref[...], 0.0).astype(jnp.bfloat16)
    # Layer 2: Linear + ReLU.
    h2 = jnp.dot(h1, w2_ref[...], preferred_element_type=jnp.float32)
    h2 = jnp.maximum(h2 + b2_ref[...], 0.0).astype(jnp.bfloat16)
    # Layer 3: Linear (no activation), lane-dense (128-wide padded) output.
    out = jnp.dot(h2, w3_ref[...], preferred_element_type=jnp.float32)
    o_ref[...] = (out + b3_ref[...]).astype(o_ref.dtype)


def init_epdm_params(key, latent_size, num_actions, hidden=(512, 512)):
    """Deterministic synthetic parameters (shapes match the PyTorch module).

    Weights are stored as [in_features, out_features] (== PyTorch W.T);
    biases as [1, out]. Everything f32 — kernel-ready casting/padding happens
    in prepare_kernel_params.
    """
    input_dim = latent_size + num_actions
    dims = [input_dim, hidden[0], hidden[1], latent_size]
    keys = jax.random.split(key, 6)
    params = []
    for i in range(3):
        fan_in, fan_out = dims[i], dims[i + 1]
        scale = 1.0 / jnp.sqrt(jnp.float32(fan_in))
        w = jax.random.uniform(keys[2 * i], (fan_in, fan_out),
                               minval=-scale, maxval=scale, dtype=jnp.float32)
        b = jax.random.uniform(keys[2 * i + 1], (1, fan_out),
                               minval=-scale, maxval=scale, dtype=jnp.float32)
        params += [w, b]
    return tuple(params)


def prepare_kernel_params(params):
    """Cast weights to bf16 (f32 biases) and pad the final layer to a
    lane-dense (multiple-of-128) output width."""
    w1, b1, w2, b2, w3, b3 = params
    out_dim = w3.shape[1]
    padded_out = ((out_dim + 127) // 128) * 128
    pad = padded_out - out_dim
    return (w1.astype(jnp.bfloat16), b1.astype(jnp.float32),
            w2.astype(jnp.bfloat16), b2.astype(jnp.float32),
            jnp.pad(w3, ((0, 0), (0, pad))).astype(jnp.bfloat16),
            jnp.pad(b3, ((0, 0), (0, pad))).astype(jnp.float32))


def epdm_forward(state, action, kparams, out_dim):
    """Batch-tiled fused 3-layer MLP forward."""
    w1, b1, w2, b2, w3, b3 = kparams
    batch = state.shape[0]
    in_dim = w1.shape[0]
    h1_dim = w1.shape[1]
    h2_dim = w2.shape[1]
    padded_out = w3.shape[1]

    # Single fused layer-1 operand: concat(state, action) -> (B, in_dim) bf16.
    x = jnp.concatenate([state, action], axis=1).astype(jnp.bfloat16)

    # Batch tile. Large batches: tm=1024 so per-step MXU work dominates the
    # ~0.35 us grid-step overhead (VMEM footprint stays a few MB, within the
    # explicit 32 MiB scoped limit on every TPU generation). Small batches
    # round up to a multiple of 16 (bf16 sublane packing).
    TM_MAX = 1024
    if batch <= TM_MAX:
        tm = max(16, -(-batch // 16) * 16)
    else:
        tm = TM_MAX
    padded_b = -(-batch // tm) * tm
    if padded_b != batch:
        x = jnp.pad(x, ((0, padded_b - batch), (0, 0)))

    flops = 2 * padded_b * (in_dim * h1_dim + h1_dim * h2_dim
                            + h2_dim * padded_out)
    bytes_accessed = (
        padded_b * in_dim * 2                                          # x (bf16)
        + (in_dim * h1_dim + h1_dim * h2_dim + h2_dim * padded_out) * 2  # W (bf16)
        + (h1_dim + h2_dim + padded_out) * 4                           # biases (f32)
        + padded_b * padded_out * 4)                                   # output (f32)

    out = pl.pallas_call(
        _epdm_kernel,
        out_shape=jax.ShapeDtypeStruct((padded_b, padded_out), jnp.float32),
        grid=(padded_b // tm,),
        in_specs=[
            pl.BlockSpec((tm, in_dim), lambda i: (i, 0)),          # x tile
            pl.BlockSpec((in_dim, h1_dim), lambda i: (0, 0)),      # W1 (resident)
            pl.BlockSpec((1, h1_dim), lambda i: (0, 0)),           # b1 (resident)
            pl.BlockSpec((h1_dim, h2_dim), lambda i: (0, 0)),      # W2 (resident)
            pl.BlockSpec((1, h2_dim), lambda i: (0, 0)),           # b2 (resident)
            pl.BlockSpec((h2_dim, padded_out), lambda i: (0, 0)),  # W3 (resident)
            pl.BlockSpec((1, padded_out), lambda i: (0, 0)),       # b3 (resident)
        ],
        out_specs=pl.BlockSpec((tm, padded_out), lambda i: (i, 0)),
        compiler_params=pltpu.CompilerParams(
            dimension_semantics=("parallel",),
            vmem_limit_bytes=32 * 1024 * 1024),
        cost_estimate=pl.CostEstimate(flops=flops, transcendentals=0,
                                      bytes_accessed=bytes_accessed),
    )(x, w1, b1, w2, b2, w3, b3)

    # Padded batch rows / padded output lanes are garbage/zero; slice them off.
    return out[:batch, :out_dim]


def epdm_reference(state, action, params):
    """Pure-JAX f32 reference for correctness check."""
    w1, b1, w2, b2, w3, b3 = params
    x = jnp.concatenate([state, action], axis=1)
    h1 = jnp.maximum(x @ w1 + b1, 0.0)
    h2 = jnp.maximum(h1 @ w2 + b2, 0.0)
    return h2 @ w3 + b3


if __name__ == "__main__":
    latent_size = 32
    num_actions = 8
    batch = 2

    key = jax.random.PRNGKey(0)
    k_state, k_action, k_params = jax.random.split(key, 3)

    state = jax.random.normal(k_state, (batch, latent_size), dtype=jnp.float32)
    action = jax.random.normal(k_action, (batch, num_actions), dtype=jnp.float32)

    params = init_epdm_params(k_params, latent_size, num_actions)
    kparams = prepare_kernel_params(params)

    out = epdm_forward(state, action, kparams, out_dim=latent_size)
    out = jax.block_until_ready(out)

    ref = epdm_reference(state, action, params)
    assert out.shape == (batch, latent_size)
    # bf16 MXU operands (f32 accumulation) -> loosened tolerance vs f32 ref.
    assert jnp.allclose(out, ref, atol=5e-2, rtol=5e-2), "mismatch vs reference"

    print("KERNEL_OK")
</pallas_src>

<mosaic_0001>
module attributes {stable_mosaic.version = 11 : i64} {
  func.func @_epdm_kernel(%arg0: i32, %arg1: memref<16x40xbf16, #tpu.memory_space<vmem>>, %arg2: memref<40x512xbf16, #tpu.memory_space<vmem>>, %arg3: memref<1x512xf32, #tpu.memory_space<vmem>>, %arg4: memref<512x512xbf16, #tpu.memory_space<vmem>>, %arg5: memref<1x512xf32, #tpu.memory_space<vmem>>, %arg6: memref<512x128xbf16, #tpu.memory_space<vmem>>, %arg7: memref<1x128xf32, #tpu.memory_space<vmem>>, %arg8: memref<16x128xf32, #tpu.memory_space<vmem>>) attributes {dimension_semantics = [#tpu.dimension_semantics<parallel>], iteration_bounds = array<i64: 1>, scalar_prefetch = 0 : i64, scratch_operands = 0 : i64, tpu.core_type = #tpu.core_type<tc>, window_params = [{transform_indices = @transform_0, window_bounds = array<i64: 16, 40>}, {pipeline_mode = #tpu.pipeline_mode<synchronous>, transform_indices = @transform_1, window_bounds = array<i64: 40, 512>}, {pipeline_mode = #tpu.pipeline_mode<synchronous>, transform_indices = @transform_2, window_bounds = array<i64: 1, 512>}, {pipeline_mode = #tpu.pipeline_mode<synchronous>, transform_indices = @transform_3, window_bounds = array<i64: 512, 512>}, {pipeline_mode = #tpu.pipeline_mode<synchronous>, transform_indices = @transform_4, window_bounds = array<i64: 1, 512>}, {pipeline_mode = #tpu.pipeline_mode<synchronous>, transform_indices = @transform_5, window_bounds = array<i64: 512, 128>}, {pipeline_mode = #tpu.pipeline_mode<synchronous>, transform_indices = @transform_6, window_bounds = array<i64: 1, 128>}, {transform_indices = @transform_7, window_bounds = array<i64: 16, 128>}]} {
    %c0 = arith.constant 0 : index
    %c0_0 = arith.constant 0 : index
    %0 = vector.load %arg1[%c0, %c0_0] : memref<16x40xbf16, #tpu.memory_space<vmem>>, vector<16x40xbf16>
    %c0_1 = arith.constant 0 : index
    %c0_2 = arith.constant 0 : index
    %1 = vector.load %arg2[%c0_1, %c0_2] : memref<40x512xbf16, #tpu.memory_space<vmem>>, vector<40x512xbf16>
    %cst = arith.constant dense<0.000000e+00> : vector<16x512xf32>
    %2 = tpu.matmul %0, %1, %cst {dimension_numbers = #tpu.dot_dimension_numbers<[1], [0], [0], [1], [0, 0, 1, 1], [], []>} : vector<16x40xbf16>, vector<40x512xbf16>, vector<16x512xf32> -> vector<16x512xf32>
    %c0_3 = arith.constant 0 : index
    %c0_4 = arith.constant 0 : index
    %3 = vector.load %arg3[%c0_3, %c0_4] : memref<1x512xf32, #tpu.memory_space<vmem>>, vector<1x512xf32>
    %4 = vector.broadcast %3 : vector<1x512xf32> to vector<16x512xf32>
    %5 = arith.addf %2, %4 : vector<16x512xf32>
    %cst_5 = arith.constant 0.000000e+00 : f32
    %6 = vector.broadcast %cst_5 : f32 to vector<16x512xf32>
    %7 = arith.maximumf %5, %6 : vector<16x512xf32>
    %8 = arith.truncf %7 : vector<16x512xf32> to vector<16x512xbf16>
    %c0_6 = arith.constant 0 : index
    %c0_7 = arith.constant 0 : index
    %9 = vector.load %arg4[%c0_6, %c0_7] : memref<512x512xbf16, #tpu.memory_space<vmem>>, vector<512x512xbf16>
    %cst_8 = arith.constant dense<0.000000e+00> : vector<16x512xf32>
    %10 = tpu.matmul %8, %9, %cst_8 {dimension_numbers = #tpu.dot_dimension_numbers<[1], [0], [0], [1], [0, 0, 1, 1], [], []>} : vector<16x512xbf16>, vector<512x512xbf16>, vector<16x512xf32> -> vector<16x512xf32>
    %c0_9 = arith.constant 0 : index
    %c0_10 = arith.constant 0 : index
    %11 = vector.load %arg5[%c0_9, %c0_10] : memref<1x512xf32, #tpu.memory_space<vmem>>, vector<1x512xf32>
    %12 = vector.broadcast %11 : vector<1x512xf32> to vector<16x512xf32>
    %13 = arith.addf %10, %12 : vector<16x512xf32>
    %cst_11 = arith.constant 0.000000e+00 : f32
    %14 = vector.broadcast %cst_11 : f32 to vector<16x512xf32>
    %15 = arith.maximumf %13, %14 : vector<16x512xf32>
    %16 = arith.truncf %15 : vector<16x512xf32> to vector<16x512xbf16>
    %c0_12 = arith.constant 0 : index
    %c0_13 = arith.constant 0 : index
    %17 = vector.load %arg6[%c0_12, %c0_13] : memref<512x128xbf16, #tpu.memory_space<vmem>>, vector<512x128xbf16>
    %cst_14 = arith.constant dense<0.000000e+00> : vector<16x128xf32>
    %18 = tpu.matmul %16, %17, %cst_14 {dimension_numbers = #tpu.dot_dimension_numbers<[1], [0], [0], [1], [0, 0, 1, 1], [], []>} : vector<16x512xbf16>, vector<512x128xbf16>, vector<16x128xf32> -> vector<16x128xf32>
    %c0_15 = arith.constant 0 : index
    %c0_16 = arith.constant 0 : index
    %19 = vector.load %arg7[%c0_15, %c0_16] : memref<1x128xf32, #tpu.memory_space<vmem>>, vector<1x128xf32>
    %20 = vector.broadcast %19 : vector<1x128xf32> to vector<16x128xf32>
    %21 = arith.addf %18, %20 : vector<16x128xf32>
    %c0_17 = arith.constant 0 : index
    %c0_18 = arith.constant 0 : index
    %22 = vector.load %arg8[%c0_17, %c0_18] : memref<16x128xf32, #tpu.memory_space<vmem>>, vector<16x128xf32>
    tpu.vector_store %arg8[%c0_17, %c0_18], %21 {strides = array<i32>} : memref<16x128xf32, #tpu.memory_space<vmem>>, vector<16x128xf32>,
    return
  }
  func.func @transform_0(%arg0: i32) -> (i32, i32) {
    %c0_i32 = arith.constant 0 : i32
    %c0_i32_0 = arith.constant 0 : i32
    return %arg0, %c0_i32 : i32, i32
  }
  func.func @transform_1(%arg0: i32) -> (i32, i32) {
    %c0_i32 = arith.constant 0 : i32
    %c0_i32_0 = arith.constant 0 : i32
    %c0_i32_1 = arith.constant 0 : i32
    return %c0_i32, %c0_i32_0 : i32, i32
  }
  func.func @transform_2(%arg0: i32) -> (i32, i32) {
    %c0_i32 = arith.constant 0 : i32
    %c0_i32_0 = arith.constant 0 : i32
    %c0_i32_1 = arith.constant 0 : i32
    return %c0_i32, %c0_i32_0 : i32, i32
  }
  func.func @transform_3(%arg0: i32) -> (i32, i32) {
    %c0_i32 = arith.constant 0 : i32
    %c0_i32_0 = arith.constant 0 : i32
    %c0_i32_1 = arith.constant 0 : i32
    return %c0_i32, %c0_i32_0 : i32, i32
  }
  func.func @transform_4(%arg0: i32) -> (i32, i32) {
    %c0_i32 = arith.constant 0 : i32
    %c0_i32_0 = arith.constant 0 : i32
    %c0_i32_1 = arith.constant 0 : i32
    return %c0_i32, %c0_i32_0 : i32, i32
  }
  func.func @transform_5(%arg0: i32) -> (i32, i32) {
    %c0_i32 = arith.constant 0 : i32
    %c0_i32_0 = arith.constant 0 : i32
    %c0_i32_1 = arith.constant 0 : i32
    return %c0_i32, %c0_i32_0 : i32, i32
  }
  func.func @transform_6(%arg0: i32) -> (i32, i32) {
    %c0_i32 = arith.constant 0 : i32
    %c0_i32_0 = arith.constant 0 : i32
    %c0_i32_1 = arith.constant 0 : i32
    return %c0_i32, %c0_i32_0 : i32, i32
  }
  func.func @transform_7(%arg0: i32) -> (i32, i32) {
    %c0_i32 = arith.constant 0 : i32
    %c0_i32_0 = arith.constant 0 : i32
    return %arg0, %c0_i32 : i32, i32
  }
}

</mosaic_0001>

<bundles_post_ra>
// kernel: tpu_custom_call.1
= control target key start
LH: loop header
LB: loop body
LE: loop exit
PB: predicated region body
PF: predicated region fallthrough
CT: control target
= control target key end

     0   :  { %12 = vsyncpa [#allocation3], 0  ;;  %s2790_s0 = inlined_call_operand.hbm [shape: bf16[16,40], index: 0, kind: input, shape index: {}]   ;;  %s2791_s1 = inlined_call_operand.hbm [shape: bf16[40,512], index: 1, kind: input, shape index: {}]   ;;  %s2792_s2 = inlined_call_operand.hbm [shape: f32[1,512], index: 2, kind: input, shape index: {}]   ;;  %s2793_s3 = inlined_call_operand.hbm [shape: bf16[512,512], index: 3, kind: input, shape index: {}]   ;;  %s2794_s4 = inlined_call_operand.hbm [shape: f32[1,512], index: 4, kind: input, shape index: {}]   ;;  %s2795_s5 = inlined_call_operand.hbm [shape: bf16[512,128], index: 5, kind: input, shape index: {}]   ;;  %s2796_s6 = inlined_call_operand.vmem [shape: f32[1,128], index: 6, kind: input, shape index: {}]   ;;  %s2797_s7 = inlined_call_operand.hbm [shape: f32[16,128], index: 7, kind: output, shape index: {}]  }
   0x1   :  { %13 = vsyncpa [#allocation6], 0 }
   0x2   :  { %14 = vsyncpa [#allocation9], 0 }
   0x3   :  { %15 = vsyncpa [#allocation12], 0  ;;  %s34_s26 = sshll.u32 %s2791_s1, 4  ;;  %s35_s26 = int_to_ptr.hbm [resolvable:$true] %s34_s26 }
   0x4   :  { %16 = vsyncpa [#allocation4], 0  ;;  %s2675_s27 = smov [#allocation5]   ;;  %s58_s8 = sshll.u32 %s2793_s3, 4  ;;  %s59_s8 = int_to_ptr.hbm [resolvable:$true] %s58_s8 }
   0x5   :  { %s36_s28 = sshll.u32 %s2675_s27, 4  ;;  %s2676_s9 = smov 256   ;;  %s37_s28 = int_to_ptr.vmem [resolvable:$true] %s36_s28 }
   0x6   :  { %s2677_s10 = smov 16   ;;  %s2678_s11 = smov [#allocation8]  }
   0x7   :  { %42 = dma.hbm_to_vmem [thread:$0]  %s35_s26, 1280, %s37_s28, [#allocation6], %s2676_s9, %s2676_s9, %s2677_s10  }
   0x8   :  { %s60_s12 = sshll.u32 %s2678_s11, 4  ;;  %s21_s15 = sshll.u32 %s2790_s0, 4  ;;  %s61_s12 = int_to_ptr.vmem [resolvable:$true] %s60_s12  ;;  %s22_s15 = int_to_ptr.hbm [resolvable:$true] %s21_s15 }
   0x9   :  { %66 = dma.hbm_to_vmem [thread:$0]  %s59_s8, 16384, %s61_s12, [#allocation9], %s2676_s9, %s2676_s9, %s2677_s10  }
   0xa   :  { %s2679_s1 = smov [#allocation2]   ;;  %s48_s3 = sshll.u32 %s2792_s2, 4  ;;  %s49_s3 = int_to_ptr.hbm [resolvable:$true] %s48_s3 }
   0xb   :  { %s23_s16 = sshll.u32 %s2679_s1, 4  ;;  %s2680_s19 = smov 64   ;;  %s24_s16 = int_to_ptr.vmem [resolvable:$true] %s23_s16 }
   0xc   :  { %s2681_s20 = smov 4   ;;  %s2682_s21 = smov [#allocation7]  }
   0xd   :  { %29 = dma.hbm_to_vmem [thread:$0]  %s22_s15, 128, %s24_s16, [#allocation3], %s2680_s19, %s2680_s19, %s2681_s20  }
   0xe   :  { %s50_s22 = sshll.u32 %s2682_s21, 4  ;;  %s72_s0 = sshll.u32 %s2794_s4, 4  ;;  %s51_s22 = int_to_ptr.vmem [resolvable:$true] %s50_s22  ;;  %s73_s0 = int_to_ptr.hbm [resolvable:$true] %s72_s0 }
   0xf   :  { %53 = dma.hbm_to_vmem [thread:$0]  %s49_s3, 64, %s51_s22, [#allocation6]  }
  0x10   :  { %s82_s27 = sshll.u32 %s2795_s5, 4  ;;  %s2683_s28 = smov [#allocation10]   ;;  %s83_s27 = int_to_ptr.hbm [resolvable:$true] %s82_s27 }
  0x11   :  { %s74_s29 = sshll.u32 %s2683_s28, 4  ;;  %s2684_s2 = smov [#allocation11]   ;;  %s75_s29 = int_to_ptr.vmem [resolvable:$true] %s74_s29 }
  0x12   :  { %77 = dma.hbm_to_vmem [thread:$0]  %s73_s0, 64, %s75_s29, [#allocation9]  }
  0x13   :  { %s84_s30 = sshll.u32 %s2684_s2, 4  ;;  %s85_s30 = int_to_ptr.vmem [resolvable:$true] %s84_s30 }
  0x14   :  { %90 = dma.hbm_to_vmem [thread:$0]  %s83_s27, 4096, %s85_s30, [#allocation12], %s2680_s19, %s2680_s19, %s2681_s20  }
  0x15   :  { %2665 = dma.done.wait [#allocation3], 128  }
  0x16   :  { %2666 = vsyncadd [#allocation3], 4294967168 }
  0x17   :  { %2667 = dma.done.wait [#allocation6], 1344  }
  0x18   :  { %2668 = vsyncadd [#allocation6], 4294965952 }
  0x19   :  { %2669 = dma.done.wait [#allocation9], 16448  }
  0x1a   :  { %2670 = vsyncadd [#allocation9], 4294950848 }
  0x1b   :  { %2671 = dma.done.wait [#allocation12], 4096  }
  0x1c   :  { %2672 = vsyncadd [#allocation12], 4294963200  ;;  %v128_v0 = vld [vmem:[#allocation5 + $0x40] sm:$0xff]  ;;  %v129_v1 = vld [vmem:[#allocation5 + $0x48] sm:$0xff]  ;;  %vm199_vm0 = vcmask 1043456   ;;  %vm195_vm1 = vcmask 326656  }
  0x1d   :  { %v171_v2 = vunpack.c.l.b16 %v128_v0  ;;  %v172_v3 = vunpack.c.h.b16 %v128_v0  ;;  %v173_v4 = vunpack.c.l.b16 %v129_v1  ;;  %v174_v5 = vunpack.c.h.b16 %v129_v1  ;;  %v1656_v6 = vld [vmem:[#allocation5 + $0x20] sm:$0xf]  ;;  %v2321_v7 = vld [vmem:[#allocation5 + $0x2c] sm:$0xf0]  ;;  %v2319_v12 = vld [vmem:[#allocation5 + $0x24] sm:$0xf] }
  0x1e   :  { %v1658_v13 = vld [vmem:[#allocation5 + $0x30] sm:$0xf0]  ;;  %v1664_v14 = vld [vmem:[#allocation5 + $0x28] sm:$0xf]  ;;  %v2322_v15 = vld [vmem:[#allocation5 + $0x34] sm:$0xf0]  ;;  %v1657_v22 = vor.u32 %v2321_v7, %v1656_v6 }
  0x1f   :  { %v183_v8 = vpack.c.b16 %v171_v2, %v171_v2  ;;  %v184_v9 = vpack.c.b16 %v172_v3, %v172_v3  ;;  %v185_v10 = vpack.c.b16 %v173_v4, %v173_v4  ;;  %v186_v11 = vpack.c.b16 %v174_v5, %v174_v5  ;;  %v2320_v16 = vld [vmem:[#allocation5 + $0x2c] sm:$0xf]  ;;  %v1666_v17 = vld [vmem:[#allocation5 + $0x38] sm:$0xf0]  ;;  %v1640_v24 = vld [vmem:[#allocation5] sm:$0xf] }
  0x20   :  { %v1661_v23 = vor.u32 %v2319_v12, %v1658_v13  ;;  %v2317_v25 = vld [vmem:[#allocation5 + $0xc] sm:$0xf0]  ;;  %v2315_v26 = vld [vmem:[#allocation5 + $0x4] sm:$0xf]  ;;  %v1665_v27 = vor.u32 %v2322_v15, %v1664_v14  ;;  %v1669_v28 = vor.u32 %v2320_v16, %v1666_v17  ;;  %v1642_v29 = vld [vmem:[#allocation5 + $0x10] sm:$0xf0] }
  0x21   :  { %v201_v18 = vsel %vm199_vm0, %v183_v8, 0  ;;  %v204_v19 = vsel %vm199_vm0, %v184_v9, 0  ;;  %v207_v20 = vsel %vm199_vm0, %v185_v10, 0  ;;  %v210_v21 = vsel %vm199_vm0, %v186_v11, 0  ;;  %v1648_v30 = vld [vmem:[#allocation5 + $0x8] sm:$0xf] }
  0x22   :  { %217 = vmatpush.bf16.msra.mxu0 %v201_v18  ;;  %231 = vmatpush.bf16.msra.mxu1 %v204_v19  ;;  %v2318_v31 = vld [vmem:[#allocation5 + $0x14] sm:$0xf0]  ;;  %v2316_v32 = vld [vmem:[#allocation5 + $0xc] sm:$0xf]  ;;  %v1650_v33 = vld [vmem:[#allocation5 + $0x18] sm:$0xf0]  ;;  %v1641_v38 = vor.u32 %v2317_v25, %v1640_v24  ;;  %v1645_v39 = vor.u32 %v2315_v26, %v1642_v29 }
  0x23   :  { %245 = vmatpush.bf16.msra.mxu2 %v207_v20  ;;  %259 = vmatpush.bf16.msra.mxu3 %v210_v21  ;;  %v1788_v34 = vld [vmem:[#allocation8 + $0xe0] sm:$0xf]  ;;  %v2353_v35 = vld [vmem:[#allocation8 + $0xec] sm:$0xf0]  ;;  %v1649_v40 = vor.u32 %v2318_v31, %v1648_v30  ;;  %v1653_v41 = vor.u32 %v2316_v32, %v1650_v33  ;;  %v2314_v42 = vld [vmem:[#allocation2] sm:$0xff]  ;;  %s2685_s8 = smov [#allocation13]  }
  0x24   :  { %v1916_v36 = vld [vmem:[#allocation8 + $0x1e0] sm:$0xf]  ;;  %v2385_v37 = vld [vmem:[#allocation8 + $0x1ec] sm:$0xf0]  ;;  %v1789_v45 = vor.u32 %v2353_v35, %v1788_v34  ;;  %s1616_s9 = sshll.u32 %s2685_s8, 4  ;;  %s1618_s12 = sshll.u32 %s2797_s7, 4  ;;  %s1617_s9 = int_to_ptr.vmem [resolvable:$true] %s1616_s9  ;;  %s1619_s12 = int_to_ptr.hbm [resolvable:$true] %s1618_s12 }
  0x25   :  { %v1772_v43 = vld [vmem:[#allocation8 + $0xc0] sm:$0xf]  ;;  %v1917_v46 = vor.u32 %v2385_v37, %v1916_v36  ;;  %v2417_v47 = vld [vmem:[#allocation8 + $0x2ec] sm:$0xf0]  ;;  %s2687_s13 = smov 8  }
  0x26   :  { %218 = vmatpush.bf16.msra.mxu0 %v1657_v22  ;;  %232 = vmatpush.bf16.msra.mxu1 %v1661_v23  ;;  %v2044_v44 = vld [vmem:[#allocation8 + $0x2e0] sm:$0xf]  ;;  %v2449_v49 = vld [vmem:[#allocation8 + $0x3ec] sm:$0xf0] }
  0x27   :  { %246 = vmatpush.bf16.msra.mxu2 %v1665_v27  ;;  %260 = vmatpush.bf16.msra.mxu3 %v1669_v28  ;;  %v2172_v48 = vld [vmem:[#allocation8 + $0x3e0] sm:$0xf]  ;;  %v2349_v50 = vld [vmem:[#allocation8 + $0xcc] sm:$0xf0]  ;;  %v2045_v53 = vor.u32 %v2417_v47, %v2044_v44 }
  0x28   :  { %v1900_v51 = vld [vmem:[#allocation8 + $0x1c0] sm:$0xf]  ;;  %v2381_v52 = vld [vmem:[#allocation8 + $0x1cc] sm:$0xf0]  ;;  %v2173_v54 = vor.u32 %v2449_v49, %v2172_v48  ;;  %v1773_v57 = vor.u32 %v2349_v50, %v1772_v43 }
  0x29   :  { %v1756_v55 = vld [vmem:[#allocation8 + $0xa0] sm:$0xf]  ;;  %v1901_v58 = vor.u32 %v2381_v52, %v1900_v51  ;;  %v2413_v59 = vld [vmem:[#allocation8 + $0x2cc] sm:$0xf0] }
  0x2a   :  { %219 = vmatpush.bf16.msra.mxu0 %v1641_v38  ;;  %233 = vmatpush.bf16.msra.mxu1 %v1645_v39  ;;  %v2028_v56 = vld [vmem:[#allocation8 + $0x2c0] sm:$0xf]  ;;  %v2445_v61 = vld [vmem:[#allocation8 + $0x3cc] sm:$0xf0] }
  0x2b   :  { %247 = vmatpush.bf16.msra.mxu2 %v1649_v40  ;;  %261 = vmatpush.bf16.msra.mxu3 %v1653_v41  ;;  %v2156_v60 = vld [vmem:[#allocation8 + $0x3c0] sm:$0xf]  ;;  %v2345_v62 = vld [vmem:[#allocation8 + $0xac] sm:$0xf0]  ;;  %v2029_v1 = vor.u32 %v2413_v59, %v2028_v56 }
  0x2c   :  { %v1884_v63 = vld [vmem:[#allocation8 + $0x1a0] sm:$0xf]  ;;  %v2377_v0 = vld [vmem:[#allocation8 + $0x1ac] sm:$0xf0]  ;;  %v2157_v2 = vor.u32 %v2445_v61, %v2156_v60  ;;  %v1757_v5 = vor.u32 %v2345_v62, %v1756_v55  ;;  %v2351_v61 = vld [vmem:[#allocation8 + $0xe4] sm:$0xf] }
  0x2d   :  { %1670 = vmatmul.msk.bf16.vlgmr.msra.gmra.mxu0 %vm195_vm1, %v2314_v42  ;;  %1671 = vmatmul.msk.bf16.vlgmr.msra.gmra.mxu1 %vm195_vm1, %v2314_v42  ;;  %v1740_v3 = vld [vmem:[#allocation8 + $0x80] sm:$0xf]  ;;  %v1885_v6 = vor.u32 %v2377_v0, %v1884_v63  ;;  %v2409_v7 = vld [vmem:[#allocation8 + $0x2ac] sm:$0xf0]  ;;  %v1790_v62 = vld [vmem:[#allocation8 + $0xf0] sm:$0xf0] }
  0x2e   :  { %1058 = vmatpush.bf16.msrb.mxu0 %v1789_v45  ;;  %1072 = vmatpush.bf16.msrb.mxu1 %v1917_v46  ;;  %v2012_v4 = vld [vmem:[#allocation8 + $0x2a0] sm:$0xf]  ;;  %v2441_v9 = vld [vmem:[#allocation8 + $0x3ac] sm:$0xf0]  ;;  %v2383_v63 = vld [vmem:[#allocation8 + $0x1e4] sm:$0xf] }
  0x2f   :  { %1672 = vmatmul.msk.bf16.vlgmr.msra.gmra.mxu2 %vm195_vm1, %v2314_v42  ;;  %1673 = vmatmul.msk.bf16.vlgmr.msra.gmra.mxu3 %vm195_vm1, %v2314_v42  ;;  %v2140_v8 = vld [vmem:[#allocation8 + $0x3a0] sm:$0xf]  ;;  %v2341_v10 = vld [vmem:[#allocation8 + $0x8c] sm:$0xf0]  ;;  %v2013_v13 = vor.u32 %v2409_v7, %v2012_v4  ;;  %v1918_v0 = vld [vmem:[#allocation8 + $0x1f0] sm:$0xf0] }
  0x30   :  { %1086 = vmatpush.bf16.msrb.mxu2 %v2045_v53  ;;  %1100 = vmatpush.bf16.msrb.mxu3 %v2173_v54  ;;  %v1868_v11 = vld [vmem:[#allocation8 + $0x180] sm:$0xf]  ;;  %v2373_v12 = vld [vmem:[#allocation8 + $0x18c] sm:$0xf0]  ;;  %v2141_v14 = vor.u32 %v2441_v9, %v2140_v8  ;;  %v1741_v17 = vor.u32 %v2341_v10, %v1740_v3  ;;  %v2347_v7 = vld [vmem:[#allocation8 + $0xc4] sm:$0xf] }
  0x31   :  { %v1724_v15 = vld [vmem:[#allocation8 + $0x60] sm:$0xf]  ;;  %v1869_v18 = vor.u32 %v2373_v12, %v1868_v11  ;;  %v2405_v19 = vld [vmem:[#allocation8 + $0x28c] sm:$0xf0]  ;;  %v2415_v10 = vld [vmem:[#allocation8 + $0x2e4] sm:$0xf]  ;;  %v1793_v11 = vor.u32 %v2351_v61, %v1790_v62  ;;  %v1921_v12 = vor.u32 %v2383_v63, %v1918_v0 }
  0x32   :  { %1059 = vmatpush.bf16.msrb.mxu0 %v1773_v57  ;;  %1073 = vmatpush.bf16.msrb.mxu1 %v1901_v58  ;;  %v1996_v16 = vld [vmem:[#allocation8 + $0x280] sm:$0xf]  ;;  %v2437_v21 = vld [vmem:[#allocation8 + $0x38c] sm:$0xf0]  ;;  %v2331_v61 = vld [vmem:[#allocation8 + $0x44] sm:$0xf] }
  0x33   :  { %v2124_v20 = vld [vmem:[#allocation8 + $0x380] sm:$0xf]  ;;  %v2337_v22 = vld [vmem:[#allocation8 + $0x6c] sm:$0xf0]  ;;  %v1997_v25 = vor.u32 %v2405_v19, %v1996_v16  ;;  %v1774_v16 = vld [vmem:[#allocation8 + $0xd0] sm:$0xf0] }
  0x34   :  { %1087 = vmatpush.bf16.msrb.mxu2 %v2029_v1  ;;  %1101 = vmatpush.bf16.msrb.mxu3 %v2157_v2  ;;  %v1852_v23 = vld [vmem:[#allocation8 + $0x160] sm:$0xf]  ;;  %v2369_v24 = vld [vmem:[#allocation8 + $0x16c] sm:$0xf0]  ;;  %v2125_v26 = vor.u32 %v2437_v21, %v2124_v20  ;;  %v1725_v29 = vor.u32 %v2337_v22, %v1724_v15  ;;  %v2174_v15 = vld [vmem:[#allocation8 + $0x3f0] sm:$0xf0] }
  0x35   :  { %v1708_v27 = vld [vmem:[#allocation8 + $0x40] sm:$0xf]  ;;  %v1853_v30 = vor.u32 %v2369_v24, %v1852_v23  ;;  %v2401_v31 = vld [vmem:[#allocation8 + $0x26c] sm:$0xf0]  ;;  %v2343_v23 = vld [vmem:[#allocation8 + $0xa4] sm:$0xf] }
  0x36   :  { %1060 = vmatpush.bf16.msrb.mxu0 %v1757_v5  ;;  %1074 = vmatpush.bf16.msrb.mxu1 %v1885_v6  ;;  %v1980_v28 = vld [vmem:[#allocation8 + $0x260] sm:$0xf]  ;;  %v2433_v33 = vld [vmem:[#allocation8 + $0x36c] sm:$0xf0]  ;;  %v2411_v24 = vld [vmem:[#allocation8 + $0x2c4] sm:$0xf] }
  0x37   :  { %v2108_v32 = vld [vmem:[#allocation8 + $0x360] sm:$0xf]  ;;  %v2333_v34 = vld [vmem:[#allocation8 + $0x4c] sm:$0xf0]  ;;  %v1981_v37 = vor.u32 %v2401_v31, %v1980_v28  ;;  %v2443_v28 = vld [vmem:[#allocation8 + $0x3c4] sm:$0xf] }
  0x38   :  { %1088 = vmatpush.bf16.msrb.mxu2 %v2013_v13  ;;  %1102 = vmatpush.bf16.msrb.mxu3 %v2141_v14  ;;  %v1836_v35 = vld [vmem:[#allocation8 + $0x140] sm:$0xf]  ;;  %v2365_v36 = vld [vmem:[#allocation8 + $0x14c] sm:$0xf0]  ;;  %v2109_v38 = vor.u32 %v2433_v33, %v2108_v32  ;;  %v1709_v41 = vor.u32 %v2333_v34, %v1708_v27  ;;  %v2046_v13 = vld [vmem:[#allocation8 + $0x2f0] sm:$0xf0] }
  0x39   :  { %v1692_v39 = vld [vmem:[#allocation8 + $0x20] sm:$0xf]  ;;  %v1837_v42 = vor.u32 %v2365_v36, %v1836_v35  ;;  %v2397_v43 = vld [vmem:[#allocation8 + $0x24c] sm:$0xf0]  ;;  %v2447_v14 = vld [vmem:[#allocation8 + $0x3e4] sm:$0xf]  ;;  %v2049_v21 = vor.u32 %v2415_v10, %v2046_v13 }
  0x3a   :  { %1061 = vmatpush.bf16.msrb.mxu0 %v1741_v17  ;;  %1075 = vmatpush.bf16.msrb.mxu1 %v1869_v18  ;;  %v1964_v40 = vld [vmem:[#allocation8 + $0x240] sm:$0xf]  ;;  %v2429_v45 = vld [vmem:[#allocation8 + $0x34c] sm:$0xf0]  ;;  %v2379_v17 = vld [vmem:[#allocation8 + $0x1c4] sm:$0xf]  ;;  %v2177_v22 = vor.u32 %v2447_v14, %v2174_v15 }
  0x3b   :  { %v2092_v44 = vld [vmem:[#allocation8 + $0x340] sm:$0xf]  ;;  %v2329_v46 = vld [vmem:[#allocation8 + $0x2c] sm:$0xf0]  ;;  %v1965_v49 = vor.u32 %v2397_v43, %v1964_v40  ;;  %v1902_v18 = vld [vmem:[#allocation8 + $0x1d0] sm:$0xf0] }
  0x3c   :  { %1089 = vmatpush.bf16.msrb.mxu2 %v1997_v25  ;;  %1103 = vmatpush.bf16.msrb.mxu3 %v2125_v26  ;;  %v1820_v47 = vld [vmem:[#allocation8 + $0x120] sm:$0xf]  ;;  %v2361_v48 = vld [vmem:[#allocation8 + $0x12c] sm:$0xf0]  ;;  %v2093_v50 = vor.u32 %v2429_v45, %v2092_v44  ;;  %v1693_v55 = vor.u32 %v2329_v46, %v1692_v39  ;;  %v1777_v25 = vor.u32 %v2347_v7, %v1774_v16  ;;  %v2030_v27 = vld [vmem:[#allocation8 + $0x2d0] sm:$0xf0] }
  0x3d   :  { %v1676_v51 = vld [vmem:[#allocation8] sm:$0xf]  ;;  %v2325_v52 = vld [vmem:[#allocation8 + $0xc] sm:$0xf0]  ;;  %v1821_v56 = vor.u32 %v2361_v48, %v1820_v47  ;;  %v1905_v26 = vor.u32 %v2379_v17, %v1902_v18  ;;  %v2375_v31 = vld [vmem:[#allocation8 + $0x1a4] sm:$0xf]  ;;  %v2033_v33 = vor.u32 %v2411_v24, %v2030_v27 }
  0x3e   :  { %1062 = vmatpush.bf16.msrb.mxu0 %v1725_v29  ;;  %1076 = vmatpush.bf16.msrb.mxu1 %v1853_v30  ;;  %v1948_v53 = vld [vmem:[#allocation8 + $0x220] sm:$0xf]  ;;  %v2393_v54 = vld [vmem:[#allocation8 + $0x22c] sm:$0xf0]  ;;  %v1677_v5 = vor.u32 %v2325_v52, %v1676_v51  ;;  %v2158_v29 = vld [vmem:[#allocation8 + $0x3d0] sm:$0xf0] }
  0x3f   :  { %v2076_v57 = vld [vmem:[#allocation8 + $0x320] sm:$0xf]  ;;  %v2425_v58 = vld [vmem:[#allocation8 + $0x32c] sm:$0xf0]  ;;  %v1949_v1 = vor.u32 %v2393_v54, %v1948_v53  ;;  %v1758_v30 = vld [vmem:[#allocation8 + $0xb0] sm:$0xf0]  ;;  %v2161_v34 = vor.u32 %v2443_v28, %v2158_v29 }
  0x40   :  { %1090 = vmatpush.bf16.msrb.mxu2 %v1981_v37  ;;  %1104 = vmatpush.bf16.msrb.mxu3 %v2109_v38  ;;  %v1804_v59 = vld [vmem:[#allocation8 + $0x100] sm:$0xf]  ;;  %v2357_v60 = vld [vmem:[#allocation8 + $0x10c] sm:$0xf0]  ;;  %v2077_v2 = vor.u32 %v2425_v58, %v2076_v57  ;;  %v1886_v32 = vld [vmem:[#allocation8 + $0x1b0] sm:$0xf0]  ;;  %v1761_v35 = vor.u32 %v2343_v23, %v1758_v30 }
  0x41   :  { %v1932_v3 = vld [vmem:[#allocation8 + $0x200] sm:$0xf]  ;;  %v2389_v4 = vld [vmem:[#allocation8 + $0x20c] sm:$0xf0]  ;;  %v1805_v6 = vor.u32 %v2357_v60, %v1804_v59  ;;  %v1889_v36 = vor.u32 %v2375_v31, %v1886_v32  ;;  %v2339_v37 = vld [vmem:[#allocation8 + $0x84] sm:$0xf] }
  0x42   :  { %1063 = vmatpush.bf16.msrb.mxu0 %v1709_v41  ;;  %1077 = vmatpush.bf16.msrb.mxu1 %v1837_v42  ;;  %v2060_v8 = vld [vmem:[#allocation8 + $0x300] sm:$0xf]  ;;  %v2421_v9 = vld [vmem:[#allocation8 + $0x30c] sm:$0xf0]  ;;  %v1933_v19 = vor.u32 %v2389_v4, %v1932_v3  ;;  %v1742_v38 = vld [vmem:[#allocation8 + $0x90] sm:$0xf0] }
  0x43   :  { %v2061_v20 = vor.u32 %v2421_v9, %v2060_v8  ;;  %v2371_v39 = vld [vmem:[#allocation8 + $0x184] sm:$0xf]  ;;  %v1870_v40 = vld [vmem:[#allocation8 + $0x190] sm:$0xf0]  ;;  %v1745_v41 = vor.u32 %v2339_v37, %v1742_v38 }
  0x44   :  { %1091 = vmatpush.bf16.msrb.mxu2 %v1965_v49  ;;  %1105 = vmatpush.bf16.msrb.mxu3 %v2093_v50  ;;  %v1873_v42 = vor.u32 %v2371_v39, %v1870_v40  ;;  %v2407_v43 = vld [vmem:[#allocation8 + $0x2a4] sm:$0xf]  ;;  %v2014_v44 = vld [vmem:[#allocation8 + $0x2b0] sm:$0xf0]  ;;  %v130_v39 = vld [vmem:[#allocation7] sm:$0xf] }
  0x45   :  { %v2439_v45 = vld [vmem:[#allocation8 + $0x3a4] sm:$0xf]  ;;  %v2017_v46 = vor.u32 %v2407_v43, %v2014_v44  ;;  %v2142_v47 = vld [vmem:[#allocation8 + $0x3b0] sm:$0xf0]  ;;  %v133_v43 = vperm.slane %v130_v39, 1 }
  0x46   :  { %1064 = vmatpush.bf16.msrb.mxu0 %v1693_v55  ;;  %1078 = vmatpush.bf16.msrb.mxu1 %v1821_v56  ;;  %v2145_v48 = vor.u32 %v2439_v45, %v2142_v47  ;;  %v2335_v49 = vld [vmem:[#allocation8 + $0x64] sm:$0xf]  ;;  %v1726_v50 = vld [vmem:[#allocation8 + $0x70] sm:$0xf0] }
  0x47   :  { %v2367_v51 = vld [vmem:[#allocation8 + $0x164] sm:$0xf]  ;;  %v1729_v52 = vor.u32 %v2335_v49, %v1726_v50  ;;  %v1854_v53 = vld [vmem:[#allocation8 + $0x170] sm:$0xf0]  ;;  %v1796_v50 = vld [vmem:[#allocation8 + $0xe8] sm:$0xf] }
  0x48   :  { %1092 = vmatpush.bf16.msrb.mxu2 %v1949_v1  ;;  %1106 = vmatpush.bf16.msrb.mxu3 %v2077_v2  ;;  %v1857_v54 = vor.u32 %v2367_v51, %v1854_v53  ;;  %v2403_v55 = vld [vmem:[#allocation8 + $0x284] sm:$0xf]  ;;  %v1998_v56 = vld [vmem:[#allocation8 + $0x290] sm:$0xf0]  ;;  %v2354_v51 = vld [vmem:[#allocation8 + $0xf4] sm:$0xf0] }
  0x49   :  { %v2435_v57 = vld [vmem:[#allocation8 + $0x384] sm:$0xf]  ;;  %v2001_v58 = vor.u32 %v2403_v55, %v1998_v56  ;;  %v2126_v59 = vld [vmem:[#allocation8 + $0x390] sm:$0xf0]  ;;  %v1924_v56 = vld [vmem:[#allocation8 + $0x1e8] sm:$0xf] }
  0x4a   :  { %1065 = vmatpush.bf16.msrb.mxu0 %v1677_v5  ;;  %1079 = vmatpush.bf16.msrb.mxu1 %v1805_v6  ;;  %v2129_v60 = vor.u32 %v2435_v57, %v2126_v59  ;;  %v1710_v62 = vld [vmem:[#allocation8 + $0x50] sm:$0xf0]  ;;  %v2363_v63 = vld [vmem:[#allocation8 + $0x144] sm:$0xf]  ;;  %v2386_v57 = vld [vmem:[#allocation8 + $0x1f4] sm:$0xf0] }
  0x4b   :  { %v1713_v0 = vor.u32 %v2331_v61, %v1710_v62  ;;  %v1838_v1 = vld [vmem:[#allocation8 + $0x150] sm:$0xf0]  ;;  %v2399_v3 = vld [vmem:[#allocation8 + $0x264] sm:$0xf]  ;;  %v135_v59 = vperm.slane %v130_v39, 3  ;;  %v1797_v62 = vor.u32 %v2354_v51, %v1796_v50 }
  0x4c   :  { %1093 = vmatpush.bf16.msrb.mxu2 %v1933_v19  ;;  %1107 = vmatpush.bf16.msrb.mxu3 %v2061_v20  ;;  %v1841_v2 = vor.u32 %v2363_v63, %v1838_v1  ;;  %v1982_v4 = vld [vmem:[#allocation8 + $0x270] sm:$0xf0]  ;;  %v2431_v5 = vld [vmem:[#allocation8 + $0x364] sm:$0xf]  ;;  %v1925_v63 = vor.u32 %v2386_v57, %v1924_v56  ;;  %v2350_v1 = vld [vmem:[#allocation8 + $0xd4] sm:$0xf0] }
  0x4d   :  { %v1985_v6 = vor.u32 %v2399_v3, %v1982_v4  ;;  %v2110_v7 = vld [vmem:[#allocation8 + $0x370] sm:$0xf0]  ;;  %v2327_v9 = vld [vmem:[#allocation8 + $0x24] sm:$0xf]  ;;  %v1908_v4 = vld [vmem:[#allocation8 + $0x1c8] sm:$0xf] }
  0x4e   :  { %1114 = vmatpush.bf16.msra.mxu0 %v1793_v11  ;;  %1128 = vmatpush.bf16.msra.mxu1 %v1921_v12  ;;  %v2113_v8 = vor.u32 %v2431_v5, %v2110_v7  ;;  %v1694_v10 = vld [vmem:[#allocation8 + $0x30] sm:$0xf0]  ;;  %v2359_v12 = vld [vmem:[#allocation8 + $0x124] sm:$0xf]  ;;  %v2382_v5 = vld [vmem:[#allocation8 + $0x1d4] sm:$0xf0] }
  0x4f   :  { %v1697_v11 = vor.u32 %v2327_v9, %v1694_v10  ;;  %v1822_v13 = vld [vmem:[#allocation8 + $0x130] sm:$0xf0]  ;;  %v2395_v15 = vld [vmem:[#allocation8 + $0x244] sm:$0xf]  ;;  %v1860_v50 = vld [vmem:[#allocation8 + $0x168] sm:$0xf] }
  0x50   :  { %1142 = vmatpush.bf16.msra.mxu2 %v2049_v21  ;;  %1156 = vmatpush.bf16.msra.mxu3 %v2177_v22  ;;  %v1825_v14 = vor.u32 %v2359_v12, %v1822_v13  ;;  %v1966_v16 = vld [vmem:[#allocation8 + $0x250] sm:$0xf0]  ;;  %v2427_v17 = vld [vmem:[#allocation8 + $0x344] sm:$0xf]  ;;  %v2418_v12 = vld [vmem:[#allocation8 + $0x2f4] sm:$0xf0] }
  0x51   :  { %v1969_v18 = vor.u32 %v2395_v15, %v1966_v16  ;;  %v2094_v19 = vld [vmem:[#allocation8 + $0x350] sm:$0xf0]  ;;  %v2323_v21 = vld [vmem:[#allocation8 + $0x4] sm:$0xf]  ;;  %v2180_v13 = vld [vmem:[#allocation8 + $0x3e8] sm:$0xf]  ;;  %v1909_v16 = vor.u32 %v2382_v5, %v1908_v4 }
  0x52   :  { %1115 = vmatpush.bf16.msra.mxu0 %v1777_v25  ;;  %1129 = vmatpush.bf16.msra.mxu1 %v1905_v26  ;;  %v2097_v20 = vor.u32 %v2427_v17, %v2094_v19  ;;  %v1678_v22 = vld [vmem:[#allocation8 + $0x10] sm:$0xf0]  ;;  %v2355_v23 = vld [vmem:[#allocation8 + $0x104] sm:$0xf]  ;;  %v2450_v17 = vld [vmem:[#allocation8 + $0x3f4] sm:$0xf0] }
  0x53   :  { %v1681_v24 = vor.u32 %v2323_v21, %v1678_v22  ;;  %v1806_v25 = vld [vmem:[#allocation8 + $0x110] sm:$0xf0]  ;;  %v2391_v27 = vld [vmem:[#allocation8 + $0x224] sm:$0xf]  ;;  %v2346_v19 = vld [vmem:[#allocation8 + $0xb4] sm:$0xf0] }
  0x54   :  { %1143 = vmatpush.bf16.msra.mxu2 %v2033_v33  ;;  %1157 = vmatpush.bf16.msra.mxu3 %v2161_v34  ;;  %v1809_v26 = vor.u32 %v2355_v23, %v1806_v25  ;;  %v1950_v28 = vld [vmem:[#allocation8 + $0x230] sm:$0xf0]  ;;  %v2423_v29 = vld [vmem:[#allocation8 + $0x324] sm:$0xf]  ;;  %v2378_v21 = vld [vmem:[#allocation8 + $0x1b4] sm:$0xf0] }
  0x55   :  { %v2078_v30 = vld [vmem:[#allocation8 + $0x330] sm:$0xf0]  ;;  %v1953_v31 = vor.u32 %v2391_v27, %v1950_v28  ;;  %v2387_v33 = vld [vmem:[#allocation8 + $0x204] sm:$0xf]  ;;  %v2181_v27 = vor.u32 %v2450_v17, %v2180_v13  ;;  %v2370_v51 = vld [vmem:[#allocation8 + $0x174] sm:$0xf0] }
  0x56   :  { %1116 = vmatpush.bf16.msra.mxu0 %v1761_v35  ;;  %1130 = vmatpush.bf16.msra.mxu1 %v1889_v36  ;;  %v2081_v32 = vor.u32 %v2423_v29, %v2078_v30  ;;  %v1934_v34 = vld [vmem:[#allocation8 + $0x210] sm:$0xf0]  ;;  %v2419_v36 = vld [vmem:[#allocation8 + $0x304] sm:$0xf]  ;;  %v2036_v29 = vld [vmem:[#allocation8 + $0x2c8] sm:$0xf] }
  0x57   :  { %v1937_v35 = vor.u32 %v2387_v33, %v1934_v34  ;;  %v2062_v37 = vld [vmem:[#allocation8 + $0x310] sm:$0xf0]  ;;  %v2414_v30 = vld [vmem:[#allocation8 + $0x2d4] sm:$0xf0]  ;;  %v2164_v34 = vld [vmem:[#allocation8 + $0x3c8] sm:$0xf] }
  0x58   :  { %1144 = vmatpush.bf16.msra.mxu2 %v2017_v46  ;;  %1158 = vmatpush.bf16.msra.mxu3 %v2145_v48  ;;  %v2065_v38 = vor.u32 %v2419_v36, %v2062_v37  ;;  %v1748_v36 = vld [vmem:[#allocation8 + $0x88] sm:$0xf]  ;;  %v2342_v37 = vld [vmem:[#allocation8 + $0x94] sm:$0xf0] }
  0x59   :  { %v2132_v56 = vld [vmem:[#allocation8 + $0x388] sm:$0xf]  ;;  %v2438_v57 = vld [vmem:[#allocation8 + $0x394] sm:$0xf0] }
  0x5a   :  { %1117 = vmatpush.bf16.msra.mxu0 %v1745_v41  ;;  %1131 = vmatpush.bf16.msra.mxu1 %v1873_v42  ;;  %v132_v42 = vperm.slane %v130_v39, 0  ;;  %v1988_v4 = vld [vmem:[#allocation8 + $0x268] sm:$0xf]  ;;  %v2402_v5 = vld [vmem:[#allocation8 + $0x274] sm:$0xf0] }
  0x5b   :  { %v2362_v13 = vld [vmem:[#allocation8 + $0x134] sm:$0xf0] }
  0x5c   :  { %1145 = vmatpush.bf16.msra.mxu2 %v2001_v58  ;;  %1159 = vmatpush.bf16.msra.mxu3 %v2129_v60  ;;  %v134_v58 = vperm.slane %v130_v39, 2  ;;  %v2374_v39 = vld [vmem:[#allocation8 + $0x194] sm:$0xf0] }
  0x5d   :  { %v2398_v17 = vld [vmem:[#allocation8 + $0x254] sm:$0xf0] }
  0x5e   :  { %1118 = vmatpush.bf16.msra.mxu0 %v1729_v52  ;;  %1132 = vmatpush.bf16.msra.mxu1 %v1857_v54 }
  0x60   :  { %1146 = vmatpush.bf16.msra.mxu2 %v1985_v6  ;;  %1160 = vmatpush.bf16.msra.mxu3 %v2113_v8 }
  0x62   :  { %1119 = vmatpush.bf16.msra.mxu0 %v1713_v0  ;;  %1133 = vmatpush.bf16.msra.mxu1 %v1841_v2  ;;  %v1780_v0 = vld [vmem:[#allocation8 + $0xc8] sm:$0xf] }
  0x63   :  { %v1781_v10 = vor.u32 %v2350_v1, %v1780_v0  ;;  %v2133_v1 = vor.u32 %v2438_v57, %v2132_v56 }
  0x64   :  { %1147 = vmatpush.bf16.msra.mxu2 %v1969_v18  ;;  %1161 = vmatpush.bf16.msra.mxu3 %v2097_v20  ;;  %v1764_v18 = vld [vmem:[#allocation8 + $0xa8] sm:$0xf] }
  0x65   :  { %v1892_v20 = vld [vmem:[#allocation8 + $0x1a8] sm:$0xf]  ;;  %v1765_v28 = vor.u32 %v2346_v19, %v1764_v18  ;;  %v2430_v19 = vld [vmem:[#allocation8 + $0x354] sm:$0xf0] }
  0x66   :  { %1120 = vmatpush.bf16.msra.mxu0 %v1697_v11  ;;  %1134 = vmatpush.bf16.msra.mxu1 %v1825_v14  ;;  %v2052_v11 = vld [vmem:[#allocation8 + $0x2e8] sm:$0xf]  ;;  %v1893_v33 = vor.u32 %v2378_v21, %v1892_v20 }
  0x67   :  { %v2100_v18 = vld [vmem:[#allocation8 + $0x348] sm:$0xf] }
  0x68   :  { %1148 = vmatpush.bf16.msra.mxu2 %v1953_v31  ;;  %1162 = vmatpush.bf16.msra.mxu3 %v2081_v32 }
  0x6a   :  { %1121 = vmatpush.bf16.msra.mxu0 %v1681_v24  ;;  %1135 = vmatpush.bf16.msra.mxu1 %v1809_v26  ;;  %v2053_v26 = vor.u32 %v2418_v12, %v2052_v11  ;;  %v2330_v11 = vld [vmem:[#allocation8 + $0x34] sm:$0xf0]  ;;  %v1828_v12 = vld [vmem:[#allocation8 + $0x128] sm:$0xf] }
  0x6b   :  { %v1829_v21 = vor.u32 %v2362_v13, %v1828_v12  ;;  %v2372_v12 = vld [vmem:[#allocation8 + $0x18c] sm:$0xf]  ;;  %v1878_v13 = vld [vmem:[#allocation8 + $0x198] sm:$0xf0] }
  0x6c   :  { %1149 = vmatpush.bf16.msra.mxu2 %v1937_v35  ;;  %1163 = vmatpush.bf16.msra.mxu3 %v2065_v38  ;;  %v2446_v35 = vld [vmem:[#allocation8 + $0x3d4] sm:$0xf0]  ;;  %v1876_v38 = vld [vmem:[#allocation8 + $0x188] sm:$0xf] }
  0xaa   :  { %v221_v40 = vpop.f32.mrf.mxu0  ;;  %v235_v41 = vpop.f32.mrf.mxu1 }
  0xab   :  { %v222_v44 = vadd.f32 %v221_v40, %v132_v42  ;;  %v236_v45 = vadd.f32 %v235_v41, %v133_v43  ;;  %v2037_v40 = vor.u32 %v2414_v30, %v2036_v29  ;;  %v2165_v41 = vor.u32 %v2446_v35, %v2164_v34  ;;  %v2384_v30 = vld [vmem:[#allocation8 + $0x1ec] sm:$0xf]  ;;  %v1956_v34 = vld [vmem:[#allocation8 + $0x228] sm:$0xf]  ;;  %v2394_v35 = vld [vmem:[#allocation8 + $0x234] sm:$0xf0] }
  0xac   :  { %v2101_v29 = vor.u32 %v2430_v19, %v2100_v18  ;;  %v2440_v18 = vld [vmem:[#allocation8 + $0x3ac] sm:$0xf]  ;;  %v2150_v19 = vld [vmem:[#allocation8 + $0x3b8] sm:$0xf0] }
  0xad   :  { %v268_v52 = vmax.f32 %v222_v44, 0.0  ;;  %v269_v53 = vmax.f32 %v236_v45, 0.0  ;;  %v1877_v44 = vor.u32 %v2374_v39, %v1876_v38  ;;  %v2410_v45 = vld [vmem:[#allocation8 + $0x2b4] sm:$0xf0] }
  0xb2   :  { %v249_v46 = vpop.f32.mrf.mxu2  ;;  %v263_v47 = vpop.f32.mrf.mxu3 }
  0xb3   :  { %v223_v48 = vpop.f32.mrf.mxu0  ;;  %v237_v49 = vpop.f32.mrf.mxu1  ;;  %v250_v6 = vadd.f32 %v249_v46, %v134_v58  ;;  %v264_v7 = vadd.f32 %v263_v47, %v135_v59  ;;  %v2148_v46 = vld [vmem:[#allocation8 + $0x3a8] sm:$0xf]  ;;  %v2442_v47 = vld [vmem:[#allocation8 + $0x3b4] sm:$0xf0] }
  0xb4   :  { %v224_v54 = vadd.f32 %v223_v48, %v132_v42  ;;  %v238_v55 = vadd.f32 %v237_v49, %v133_v43  ;;  %v2020_v42 = vld [vmem:[#allocation8 + $0x2a8] sm:$0xf]  ;;  %v1749_v43 = vor.u32 %v2342_v37, %v1748_v36  ;;  %v2338_v49 = vld [vmem:[#allocation8 + $0x74] sm:$0xf0] }
  0xb5   :  { %v270_v22 = vmax.f32 %v250_v6, 0.0  ;;  %v271_v23 = vmax.f32 %v264_v7, 0.0  ;;  %v1732_v48 = vld [vmem:[#allocation8 + $0x68] sm:$0xf]  ;;  %v2434_v7 = vld [vmem:[#allocation8 + $0x374] sm:$0xf0] }
  0xb6   :  { %v272_v60 = vmax.f32 %v224_v54, 0.0  ;;  %v273_v61 = vmax.f32 %v238_v55, 0.0  ;;  %v2004_v54 = vld [vmem:[#allocation8 + $0x288] sm:$0xf]  ;;  %v2406_v55 = vld [vmem:[#allocation8 + $0x294] sm:$0xf0] }
  0xb7   :  { %v2005_v0 = vor.u32 %v2406_v55, %v2004_v54  ;;  %v2116_v6 = vld [vmem:[#allocation8 + $0x368] sm:$0xf]  ;;  %v2426_v37 = vld [vmem:[#allocation8 + $0x334] sm:$0xf0]  ;;  %v2448_v54 = vld [vmem:[#allocation8 + $0x3ec] sm:$0xf] }
  0xb8   :  { %v2754_v2 = vpack.c.bf16 %v272_v60, %v268_v52  ;;  %v2756_v3 = vpack.c.bf16 %v273_v61, %v269_v53  ;;  %v2021_v52 = vor.u32 %v2410_v45, %v2020_v42  ;;  %v2149_v53 = vor.u32 %v2442_v47, %v2148_v46  ;;  %v1716_v60 = vld [vmem:[#allocation8 + $0x48] sm:$0xf]  ;;  %v2334_v61 = vld [vmem:[#allocation8 + $0x54] sm:$0xf0]  ;;  %v2348_v42 = vld [vmem:[#allocation8 + $0xcc] sm:$0xf] }
  0xb9   :  { %v2084_v36 = vld [vmem:[#allocation8 + $0x328] sm:$0xf]  ;;  %v1957_v45 = vor.u32 %v2394_v35, %v1956_v34  ;;  %v1910_v47 = vld [vmem:[#allocation8 + $0x1d8] sm:$0xf0] }
  0xba   :  { %v251_v8 = vpop.f32.mrf.mxu2  ;;  %v265_v9 = vpop.f32.mrf.mxu3  ;;  %1066 = vmatmul.bf16.vlgmr.msrb.gmra.mxu0 %v2754_v2  ;;  %1080 = vmatmul.bf16.vlgmr.msrb.gmra.mxu1 %v2756_v3  ;;  %v2085_v46 = vor.u32 %v2426_v37, %v2084_v36  ;;  %v2182_v55 = vld [vmem:[#allocation8 + $0x3f8] sm:$0xf0]  ;;  %v2332_v36 = vld [vmem:[#allocation8 + $0x4c] sm:$0xf] }
  0xbb   :  { %v252_v14 = vadd.f32 %v251_v8, %v134_v58  ;;  %v266_v15 = vadd.f32 %v265_v9, %v135_v59  ;;  %1170 = vmatpush.bf16.msrb.mxu0 %v1797_v62  ;;  %1184 = vmatpush.bf16.msrb.mxu1 %v1925_v63  ;;  %v1733_v58 = vor.u32 %v2338_v49, %v1732_v48  ;;  %v1844_v62 = vld [vmem:[#allocation8 + $0x148] sm:$0xf]  ;;  %v2366_v63 = vld [vmem:[#allocation8 + $0x154] sm:$0xf0]  ;;  %v1718_v37 = vld [vmem:[#allocation8 + $0x58] sm:$0xf0] }
  0xbc   :  { %v1861_v59 = vor.u32 %v2370_v51, %v1860_v50  ;;  %v1717_v8 = vor.u32 %v2334_v61, %v1716_v60  ;;  %v1845_v9 = vor.u32 %v2366_v63, %v1844_v62  ;;  %v1940_v48 = vld [vmem:[#allocation8 + $0x208] sm:$0xf]  ;;  %v2390_v49 = vld [vmem:[#allocation8 + $0x214] sm:$0xf0]  ;;  %v1766_v61 = vld [vmem:[#allocation8 + $0xb8] sm:$0xf0] }
  0xbd   :  { %v274_v24 = vmax.f32 %v252_v14, 0.0  ;;  %v275_v25 = vmax.f32 %v266_v15, 0.0  ;;  %v1989_v14 = vor.u32 %v2402_v5, %v1988_v4  ;;  %v2117_v15 = vor.u32 %v2434_v7, %v2116_v6  ;;  %v2068_v50 = vld [vmem:[#allocation8 + $0x308] sm:$0xf]  ;;  %v2422_v51 = vld [vmem:[#allocation8 + $0x314] sm:$0xf0] }
  0xbe   :  { %v2069_v60 = vor.u32 %v2422_v51, %v2068_v50  ;;  %v2376_v62 = vld [vmem:[#allocation8 + $0x1ac] sm:$0xf]  ;;  %v1894_v63 = vld [vmem:[#allocation8 + $0x1b8] sm:$0xf0] }
  0xbf   :  { %v2760_v31 = vpack.c.bf16 %v274_v24, %v270_v22  ;;  %v2762_v32 = vpack.c.bf16 %v275_v25, %v271_v23  ;;  %1171 = vmatpush.bf16.msrb.mxu0 %v1781_v10  ;;  %1185 = vmatpush.bf16.msrb.mxu1 %v1909_v16  ;;  %v1700_v10 = vld [vmem:[#allocation8 + $0x28] sm:$0xf]  ;;  %v2326_v23 = vld [vmem:[#allocation8 + $0x14] sm:$0xf0]  ;;  %v2412_v4 = vld [vmem:[#allocation8 + $0x2cc] sm:$0xf] }
  0xc0   :  { %v1972_v16 = vld [vmem:[#allocation8 + $0x248] sm:$0xf]  ;;  %v1701_v20 = vor.u32 %v2330_v11, %v1700_v10  ;;  %v2358_v25 = vld [vmem:[#allocation8 + $0x114] sm:$0xf0]  ;;  %v2038_v5 = vld [vmem:[#allocation8 + $0x2d8] sm:$0xf0] }
  0xc1   :  { %1094 = vmatmul.bf16.vlgmr.msrb.gmra.mxu2 %v2760_v31  ;;  %1108 = vmatmul.bf16.vlgmr.msrb.gmra.mxu3 %v2762_v32  ;;  %v1684_v22 = vld [vmem:[#allocation8 + $0x8] sm:$0xf]  ;;  %v2444_v6 = vld [vmem:[#allocation8 + $0x3cc] sm:$0xf]  ;;  %v2166_v7 = vld [vmem:[#allocation8 + $0x3d8] sm:$0xf0] }
  0xc2   :  { %1198 = vmatpush.bf16.msrb.mxu2 %v2053_v26  ;;  %1212 = vmatpush.bf16.msrb.mxu3 %v2181_v27  ;;  %v1812_v24 = vld [vmem:[#allocation8 + $0x108] sm:$0xf]  ;;  %v2352_v26 = vld [vmem:[#allocation8 + $0xec] sm:$0xf]  ;;  %v1798_v27 = vld [vmem:[#allocation8 + $0xf8] sm:$0xf0]  ;;  %v1685_v38 = vor.u32 %v2326_v23, %v1684_v22 }
  0xc3   :  { %1172 = vmatpush.bf16.msrb.mxu0 %v1765_v28  ;;  %1186 = vmatpush.bf16.msrb.mxu1 %v1893_v33  ;;  %v1973_v28 = vor.u32 %v2398_v17, %v1972_v16  ;;  %v1926_v33 = vld [vmem:[#allocation8 + $0x1f8] sm:$0xf0]  ;;  %v1813_v39 = vor.u32 %v2358_v25, %v1812_v24  ;;  %v2340_v10 = vld [vmem:[#allocation8 + $0x8c] sm:$0xf] }
  0xc4   :  { %v1750_v11 = vld [vmem:[#allocation8 + $0x98] sm:$0xf0]  ;;  %v2408_v16 = vld [vmem:[#allocation8 + $0x2ac] sm:$0xf] }
  0xc5   :  { %v2022_v17 = vld [vmem:[#allocation8 + $0x2b8] sm:$0xf0]  ;;  %v2336_v22 = vld [vmem:[#allocation8 + $0x6c] sm:$0xf] }
  0xc6   :  { %1199 = vmatpush.bf16.msrb.mxu2 %v2037_v40  ;;  %1213 = vmatpush.bf16.msrb.mxu3 %v2165_v41  ;;  %v1801_v40 = vor.u32 %v2352_v26, %v1798_v27  ;;  %v1929_v41 = vor.u32 %v2384_v30, %v1926_v33  ;;  %v1734_v23 = vld [vmem:[#allocation8 + $0x78] sm:$0xf0]  ;;  %v2368_v24 = vld [vmem:[#allocation8 + $0x16c] sm:$0xf]  ;;  %v2025_v26 = vor.u32 %v2408_v16, %v2022_v17 }
  0xc7   :  { %1173 = vmatpush.bf16.msrb.mxu0 %v1749_v43  ;;  %1187 = vmatpush.bf16.msrb.mxu1 %v1877_v44  ;;  %v1782_v43 = vld [vmem:[#allocation8 + $0xd8] sm:$0xf0]  ;;  %v2380_v44 = vld [vmem:[#allocation8 + $0x1cc] sm:$0xf]  ;;  %v2153_v27 = vor.u32 %v2440_v18, %v2150_v19  ;;  %v1737_v34 = vor.u32 %v2336_v22, %v1734_v23  ;;  %v2457_v19 = vld [vmem:[#allocation11 + $0x30] sm:$0xff] }
  0xc8   :  { %v1785_v56 = vor.u32 %v2348_v42, %v1782_v43  ;;  %v1913_v57 = vor.u32 %v2380_v44, %v1910_v47  ;;  %v1862_v25 = vld [vmem:[#allocation8 + $0x178] sm:$0xf0]  ;;  %v2436_v30 = vld [vmem:[#allocation8 + $0x38c] sm:$0xf] }
  0xc9   :  { %v2134_v33 = vld [vmem:[#allocation8 + $0x398] sm:$0xf0]  ;;  %v1865_v35 = vor.u32 %v2368_v24, %v1862_v25  ;;  %v2400_v42 = vld [vmem:[#allocation8 + $0x26c] sm:$0xf]  ;;  %v2453_v24 = vld [vmem:[#allocation11 + $0x10] sm:$0xff] }
  0xca   :  { %1200 = vmatpush.bf16.msrb.mxu2 %v2021_v52  ;;  %1214 = vmatpush.bf16.msrb.mxu3 %v2149_v53  ;;  %v2416_v52 = vld [vmem:[#allocation8 + $0x2ec] sm:$0xf]  ;;  %v2054_v53 = vld [vmem:[#allocation8 + $0x2f8] sm:$0xf0] }
  0xcb   :  { %1122 = vmatmul.bf16.vlgmr.msra.gmra.mxu0 %v2754_v2  ;;  %1136 = vmatmul.bf16.vlgmr.msra.gmra.mxu1 %v2756_v3  ;;  %v1990_v43 = vld [vmem:[#allocation8 + $0x278] sm:$0xf0]  ;;  %v2432_v44 = vld [vmem:[#allocation8 + $0x36c] sm:$0xf] }
  0xcc   :  { %1174 = vmatpush.bf16.msrb.mxu0 %v1733_v58  ;;  %1188 = vmatpush.bf16.msrb.mxu1 %v1861_v59  ;;  %v2344_v58 = vld [vmem:[#allocation8 + $0xac] sm:$0xf]  ;;  %v1941_v59 = vor.u32 %v2390_v49, %v1940_v48  ;;  %v1702_v49 = vld [vmem:[#allocation8 + $0x38] sm:$0xf0] }
  0xcd   :  { %v2328_v48 = vld [vmem:[#allocation8 + $0x2c] sm:$0xf]  ;;  %v1830_v51 = vld [vmem:[#allocation8 + $0x138] sm:$0xf0] }
  0xce   :  { %1201 = vmatpush.bf16.msrb.mxu2 %v2005_v0  ;;  %1215 = vmatpush.bf16.msrb.mxu3 %v2133_v1  ;;  %v2057_v0 = vor.u32 %v2416_v52, %v2054_v53  ;;  %v2185_v1 = vor.u32 %v2448_v54, %v2182_v55  ;;  %v2360_v50 = vld [vmem:[#allocation8 + $0x12c] sm:$0xf]  ;;  %v1993_v52 = vor.u32 %v2400_v42, %v1990_v43  ;;  %v1974_v55 = vld [vmem:[#allocation8 + $0x258] sm:$0xf0] }
  0xcf   :  { %v2396_v54 = vld [vmem:[#allocation8 + $0x24c] sm:$0xf]  ;;  %v2070_v16 = vld [vmem:[#allocation8 + $0x318] sm:$0xf0] }
  0xd0   :  { %1175 = vmatpush.bf16.msrb.mxu0 %v1717_v8  ;;  %1189 = vmatpush.bf16.msrb.mxu1 %v1845_v9  ;;  %v1769_v8 = vor.u32 %v2344_v58, %v1766_v61  ;;  %v1897_v9 = vor.u32 %v2376_v62, %v1894_v63  ;;  %v1705_v58 = vor.u32 %v2328_v48, %v1702_v49  ;;  %v1686_v61 = vld [vmem:[#allocation8 + $0x18] sm:$0xf0]  ;;  %v2356_v62 = vld [vmem:[#allocation8 + $0x10c] sm:$0xf] }
  0xd1   :  { %1150 = vmatmul.bf16.vlgmr.msra.gmra.mxu2 %v2760_v31  ;;  %1164 = vmatmul.bf16.vlgmr.msra.gmra.mxu3 %v2762_v32  ;;  %v1814_v63 = vld [vmem:[#allocation8 + $0x118] sm:$0xf0]  ;;  %v2464_v25 = vld [vmem:[#allocation11 + $0x68] sm:$0xff] }
  0xd2   :  { %1202 = vmatpush.bf16.msrb.mxu2 %v1989_v14  ;;  %1216 = vmatpush.bf16.msrb.mxu3 %v2117_v15  ;;  %v2041_v14 = vor.u32 %v2412_v4, %v2038_v5  ;;  %v2169_v15 = vor.u32 %v2444_v6, %v2166_v7  ;;  %v2392_v4 = vld [vmem:[#allocation8 + $0x22c] sm:$0xf]  ;;  %v1958_v5 = vld [vmem:[#allocation8 + $0x238] sm:$0xf0] }
  0xd3   :  { %v2424_v6 = vld [vmem:[#allocation8 + $0x32c] sm:$0xf]  ;;  %v2086_v7 = vld [vmem:[#allocation8 + $0x338] sm:$0xf0] }
  0xd4   :  { %1176 = vmatpush.bf16.msrb.mxu0 %v1701_v20  ;;  %1190 = vmatpush.bf16.msrb.mxu1 %v1829_v21  ;;  %v1753_v20 = vor.u32 %v2340_v10, %v1750_v11  ;;  %v1881_v21 = vor.u32 %v2372_v12, %v1878_v13  ;;  %v2458_v10 = vld [vmem:[#allocation11 + $0x38] sm:$0xff]  ;;  %v1961_v11 = vor.u32 %v2392_v4, %v1958_v5  ;;  %v2388_v13 = vld [vmem:[#allocation8 + $0x20c] sm:$0xf] }
  0xd5   :  { %v2089_v12 = vor.u32 %v2424_v6, %v2086_v7  ;;  %v2454_v22 = vld [vmem:[#allocation11 + $0x18] sm:$0xff]  ;;  %v2481_v7 = vld [vmem:[#allocation11 + $0xf0] sm:$0xff] }
  0xd6   :  { %1203 = vmatpush.bf16.msrb.mxu2 %v1973_v28  ;;  %1217 = vmatpush.bf16.msrb.mxu3 %v2101_v29  ;;  %v2404_v28 = vld [vmem:[#allocation8 + $0x28c] sm:$0xf]  ;;  %v2006_v29 = vld [vmem:[#allocation8 + $0x298] sm:$0xf0] }
  0xd7   :  { %v2466_v23 = vld [vmem:[#allocation11 + $0x78] sm:$0xff] }
  0xd8   :  { %1177 = vmatpush.bf16.msrb.mxu0 %v1685_v38  ;;  %1191 = vmatpush.bf16.msrb.mxu1 %v1813_v39  ;;  %v2364_v38 = vld [vmem:[#allocation8 + $0x14c] sm:$0xf]  ;;  %v1846_v39 = vld [vmem:[#allocation8 + $0x158] sm:$0xf0] }
  0xd9   :  { %v1849_v47 = vor.u32 %v2364_v38, %v1846_v39  ;;  %v2459_v39 = vld [vmem:[#allocation11 + $0x40] sm:$0xff] }
  0xda   :  { %1204 = vmatpush.bf16.msrb.mxu2 %v1957_v45  ;;  %1218 = vmatpush.bf16.msrb.mxu3 %v2085_v46  ;;  %v2118_v45 = vld [vmem:[#allocation8 + $0x378] sm:$0xf0]  ;;  %v1721_v46 = vor.u32 %v2332_v36, %v1718_v37  ;;  %v2472_v36 = vld [vmem:[#allocation11 + $0xa8] sm:$0xff] }
  0xdb   :  { %1178 = vmatmul.bf16.vlgmr.msrb.gmra.mxu0 %v2754_v2  ;;  %1192 = vmatmul.bf16.vlgmr.msrb.gmra.mxu1 %v2756_v3  ;;  %v2121_v53 = vor.u32 %v2432_v44, %v2118_v45  ;;  %v2470_v45 = vld [vmem:[#allocation11 + $0x98] sm:$0xff] }
  0xdc   :  { %1226 = vmatpush.bf16.msra.mxu0 %v1801_v40  ;;  %1240 = vmatpush.bf16.msra.mxu1 %v1929_v41  ;;  %v2009_v40 = vor.u32 %v2404_v28, %v2006_v29  ;;  %v2137_v41 = vor.u32 %v2436_v30, %v2134_v33  ;;  %v2461_v30 = vld [vmem:[#allocation11 + $0x50] sm:$0xff] }
  0xdd   :  { %v2473_v33 = vld [vmem:[#allocation11 + $0xb0] sm:$0xff] }
  0xde   :  { %1205 = vmatpush.bf16.msrb.mxu2 %v1941_v59  ;;  %1219 = vmatpush.bf16.msrb.mxu3 %v2069_v60  ;;  %v1833_v59 = vor.u32 %v2360_v50, %v1830_v51  ;;  %v2324_v60 = vld [vmem:[#allocation8 + $0xc] sm:$0xf]  ;;  %v2469_v50 = vld [vmem:[#allocation11 + $0x90] sm:$0xff] }
  0xe0   :  { %1227 = vmatpush.bf16.msra.mxu0 %v1785_v56  ;;  %1241 = vmatpush.bf16.msra.mxu1 %v1913_v57  ;;  %v2428_v56 = vld [vmem:[#allocation8 + $0x34c] sm:$0xf]  ;;  %v2102_v57 = vld [vmem:[#allocation8 + $0x358] sm:$0xf0] }
  0xe1   :  { %1206 = vmatmul.bf16.vlgmr.msrb.gmra.mxu2 %v2760_v31  ;;  %1220 = vmatmul.bf16.vlgmr.msrb.gmra.mxu3 %v2762_v32 }
  0xe2   :  { %1254 = vmatpush.bf16.msra.mxu2 %v2057_v0  ;;  %1268 = vmatpush.bf16.msra.mxu3 %v2185_v1  ;;  %v1977_v0 = vor.u32 %v2396_v54, %v1974_v55  ;;  %v2105_v1 = vor.u32 %v2428_v56, %v2102_v57  ;;  %v2468_v57 = vld [vmem:[#allocation11 + $0x88] sm:$0xff] }
  0xe4   :  { %1228 = vmatpush.bf16.msra.mxu0 %v1769_v8  ;;  %1242 = vmatpush.bf16.msra.mxu1 %v1897_v9  ;;  %v1689_v8 = vor.u32 %v2324_v60, %v1686_v61  ;;  %v1817_v9 = vor.u32 %v2356_v62, %v1814_v63  ;;  %v2467_v63 = vld [vmem:[#allocation11 + $0x80] sm:$0xff] }
  0xe6   :  { %1255 = vmatpush.bf16.msra.mxu2 %v2041_v14  ;;  %1269 = vmatpush.bf16.msra.mxu3 %v2169_v15  ;;  %v1942_v14 = vld [vmem:[#allocation8 + $0x218] sm:$0xf0]  ;;  %v2420_v15 = vld [vmem:[#allocation8 + $0x30c] sm:$0xf] }
  0xe7   :  { %v1945_v17 = vor.u32 %v2388_v13, %v1942_v14  ;;  %v2073_v18 = vor.u32 %v2420_v15, %v2070_v16 }
  0xe8   :  { %1229 = vmatpush.bf16.msra.mxu0 %v1753_v20  ;;  %1243 = vmatpush.bf16.msra.mxu1 %v1881_v21  ;;  %v2456_v20 = vld [vmem:[#allocation11 + $0x28] sm:$0xff]  ;;  %v2455_v21 = vld [vmem:[#allocation11 + $0x20] sm:$0xff] }
  0xea   :  { %1256 = vmatpush.bf16.msra.mxu2 %v2025_v26  ;;  %1270 = vmatpush.bf16.msra.mxu3 %v2153_v27  ;;  %v2462_v26 = vld [vmem:[#allocation11 + $0x58] sm:$0xff] }
  0xeb   :  { %v2474_v27 = vld [vmem:[#allocation11 + $0xb8] sm:$0xff] }
  0xec   :  { %1230 = vmatpush.bf16.msra.mxu0 %v1737_v34  ;;  %1244 = vmatpush.bf16.msra.mxu1 %v1865_v35  ;;  %v2778_v34 = vld [vmem:[#allocation10] sm:$0xf]  ;;  %v2460_v35 = vld [vmem:[#allocation11 + $0x48] sm:$0xff] }
  0xed   :  { %v410_v37 = vperm.slane %v2778_v34, 0 }
  0xee   :  { %1257 = vmatpush.bf16.msra.mxu2 %v2009_v40  ;;  %1271 = vmatpush.bf16.msra.mxu3 %v2137_v41  ;;  %v2471_v40 = vld [vmem:[#allocation11 + $0xa0] sm:$0xff] }
  0xf0   :  { %1231 = vmatpush.bf16.msra.mxu0 %v1721_v46  ;;  %1245 = vmatpush.bf16.msra.mxu1 %v1849_v47 }
  0xf2   :  { %1258 = vmatpush.bf16.msra.mxu2 %v1993_v52  ;;  %1272 = vmatpush.bf16.msra.mxu3 %v2121_v53 }
  0xf4   :  { %1232 = vmatpush.bf16.msra.mxu0 %v1705_v58  ;;  %1246 = vmatpush.bf16.msra.mxu1 %v1833_v59  ;;  %v411_v58 = vperm.slane %v2778_v34, 1 }
  0xf6   :  { %1259 = vmatpush.bf16.msra.mxu2 %v1977_v0  ;;  %1273 = vmatpush.bf16.msra.mxu3 %v2105_v1  ;;  %v2482_v0 = vld [vmem:[#allocation11 + $0xf8] sm:$0xff] }
  0xf8   :  { %1233 = vmatpush.bf16.msra.mxu0 %v1689_v8  ;;  %1247 = vmatpush.bf16.msra.mxu1 %v1817_v9 }
  0xfa   :  { %1260 = vmatpush.bf16.msra.mxu2 %v1961_v11  ;;  %1274 = vmatpush.bf16.msra.mxu3 %v2089_v12  ;;  %v2480_v11 = vld [vmem:[#allocation11 + $0xe8] sm:$0xff] }
  0xfb   :  { %1234 = vmatmul.bf16.vlgmr.msra.gmra.mxu0 %v2754_v2  ;;  %1248 = vmatmul.bf16.vlgmr.msra.gmra.mxu1 %v2756_v3  ;;  %v2465_v2 = vld [vmem:[#allocation11 + $0x70] sm:$0xff]  ;;  %v2452_v3 = vld [vmem:[#allocation11 + $0x8] sm:$0xff] }
  0xfc   :  { %1554 = vmatpush.bf16.msrb.mxu0 %v2458_v10  ;;  %1568 = vmatpush.bf16.msrb.mxu1 %v2466_v23 }
  0xfe   :  { %1261 = vmatpush.bf16.msra.mxu2 %v1945_v17  ;;  %1275 = vmatpush.bf16.msra.mxu3 %v2073_v18 }
 0x100   :  { %1555 = vmatpush.bf16.msrb.mxu0 %v2457_v19  ;;  %1569 = vmatpush.bf16.msrb.mxu1 %v2465_v2  ;;  %v2479_v19 = vld [vmem:[#allocation11 + $0xe0] sm:$0xff]  ;;  %v2478_v2 = vld [vmem:[#allocation11 + $0xd8] sm:$0xff] }
 0x101   :  { %1262 = vmatmul.bf16.vlgmr.msra.gmra.mxu2 %v2760_v31  ;;  %1276 = vmatmul.bf16.vlgmr.msra.gmra.mxu3 %v2762_v32  ;;  %v2451_v31 = vld [vmem:[#allocation11] sm:$0xff] }
 0x102   :  { %v2463_v32 = vld [vmem:[#allocation11 + $0x60] sm:$0xff]  ;;  %1582 = vmatpush.bf16.msrb.mxu2 %v2474_v27  ;;  %1596 = vmatpush.bf16.msrb.mxu3 %v2482_v0  ;;  %v2477_v27 = vld [vmem:[#allocation11 + $0xd0] sm:$0xff] }
 0x104   :  { %1556 = vmatpush.bf16.msrb.mxu0 %v2456_v20  ;;  %1570 = vmatpush.bf16.msrb.mxu1 %v2464_v25 }
 0x106   :  { %1583 = vmatpush.bf16.msrb.mxu2 %v2473_v33  ;;  %1597 = vmatpush.bf16.msrb.mxu3 %v2481_v7 }
 0x108   :  { %1557 = vmatpush.bf16.msrb.mxu0 %v2455_v21  ;;  %1571 = vmatpush.bf16.msrb.mxu1 %v2463_v32  ;;  %v412_v21 = vperm.slane %v2778_v34, 2 }
 0x10a   :  { %1584 = vmatpush.bf16.msrb.mxu2 %v2472_v36  ;;  %1598 = vmatpush.bf16.msrb.mxu3 %v2480_v11 }
 0x10c   :  { %1558 = vmatpush.bf16.msrb.mxu0 %v2454_v22  ;;  %1572 = vmatpush.bf16.msrb.mxu1 %v2462_v26 }
 0x10e   :  { %1585 = vmatpush.bf16.msrb.mxu2 %v2471_v40  ;;  %1599 = vmatpush.bf16.msrb.mxu3 %v2479_v19 }
 0x110   :  { %1559 = vmatpush.bf16.msrb.mxu0 %v2453_v24  ;;  %1573 = vmatpush.bf16.msrb.mxu1 %v2461_v30  ;;  %v2476_v30 = vld [vmem:[#allocation11 + $0xc8] sm:$0xff] }
 0x112   :  { %1586 = vmatpush.bf16.msrb.mxu2 %v2470_v45  ;;  %1600 = vmatpush.bf16.msrb.mxu3 %v2478_v2 }
 0x114   :  { %1560 = vmatpush.bf16.msrb.mxu0 %v2452_v3  ;;  %1574 = vmatpush.bf16.msrb.mxu1 %v2460_v35 }
 0x116   :  { %1587 = vmatpush.bf16.msrb.mxu2 %v2469_v50  ;;  %1601 = vmatpush.bf16.msrb.mxu3 %v2477_v27 }
 0x118   :  { %1561 = vmatpush.bf16.msrb.mxu0 %v2451_v31  ;;  %1575 = vmatpush.bf16.msrb.mxu1 %v2459_v39 }
 0x11a   :  { %1588 = vmatpush.bf16.msrb.mxu2 %v2468_v57  ;;  %1602 = vmatpush.bf16.msrb.mxu3 %v2476_v30 }
 0x11e   :  { %1589 = vmatpush.bf16.msrb.mxu2 %v2467_v63 }
 0x137   :  { %v1067_v28 = vpop.f32.mrf.mxu0  ;;  %v1081_v29 = vpop.f32.mrf.mxu1 }
 0x138   :  { %v1068_v41 = vadd.f32 %v1067_v28, %v410_v37 }
 0x13a   :  { %v1082_v46 = vadd.f32 %v1081_v29, %v1068_v41 }
 0x13f   :  { %v1069_v38 = vpop.f32.mrf.mxu0  ;;  %v1083_v42 = vpop.f32.mrf.mxu1 }
 0x140   :  { %v1070_v47 = vadd.f32 %v1069_v38, %v410_v37  ;;  %v2475_v38 = vld [vmem:[#allocation11 + $0xc0] sm:$0xff] }
 0x141   :  { %1603 = vmatpush.bf16.msrb.mxu3 %v2475_v38 }
 0x142   :  { %v1084_v51 = vadd.f32 %v1083_v42, %v1070_v47  ;;  %v413_v47 = vperm.slane %v2778_v34, 3 }
 0x144   :  { %v1095_v43 = vpop.f32.mrf.mxu2  ;;  %v1109_v44 = vpop.f32.mrf.mxu3 }
 0x145   :  { %v1096_v49 = vadd.f32 %v1095_v43, %v1082_v46 }
 0x147   :  { %v1110_v54 = vadd.f32 %v1109_v44, %v1096_v49 }
 0x148   :  { %v1123_v48 = vpop.f32.mrf.mxu0  ;;  %v1137_v55 = vpop.f32.mrf.mxu1 }
 0x149   :  { %v1282_v61 = vmax.f32 %v1110_v54, 0.0  ;;  %v1124_v1 = vadd.f32 %v1123_v48, %v411_v58 }
 0x14b   :  { %v1138_v8 = vadd.f32 %v1137_v55, %v1124_v1 }
 0x14c   :  { %v1097_v52 = vpop.f32.mrf.mxu2  ;;  %v1111_v53 = vpop.f32.mrf.mxu3 }
 0x14d   :  { %v1098_v56 = vadd.f32 %v1097_v52, %v1084_v51 }
 0x14f   :  { %v1112_v59 = vadd.f32 %v1111_v53, %v1098_v56 }
 0x150   :  { %v1125_v60 = vpop.f32.mrf.mxu0  ;;  %v1139_v10 = vpop.f32.mrf.mxu1 }
 0x151   :  { %v1286_v62 = vmax.f32 %v1112_v59, 0.0  ;;  %v1126_v9 = vadd.f32 %v1125_v60, %v411_v58 }
 0x153   :  { %v1290_v4 = vpack.c.bf16 %v1286_v62, %v1282_v61  ;;  %v1140_v14 = vadd.f32 %v1139_v10, %v1126_v9 }
 0x154   :  { %v1151_v5 = vpop.f32.mrf.mxu2  ;;  %v1165_v6 = vpop.f32.mrf.mxu3 }
 0x155   :  { %1562 = vmatmul.bf16.vlgmr.msrb.gmra.mxu0 %v1290_v4  ;;  %v1152_v12 = vadd.f32 %v1151_v5, %v1138_v8  ;;  %v2496_v4 = vld [vmem:[%s2796_s6] ss:$0 sm:$0xff]  ;;  %s2686_s6 = smov 128  }
 0x157   :  { %v1166_v17 = vadd.f32 %v1165_v6, %v1152_v12 }
 0x158   :  { %v1179_v13 = vpop.f32.mrf.mxu0  ;;  %v1193_v23 = vpop.f32.mrf.mxu1 }
 0x159   :  { %v1283_v22 = vmax.f32 %v1166_v17, 0.0  ;;  %v1180_v25 = vadd.f32 %v1179_v13, %v412_v21 }
 0x15b   :  { %v1194_v28 = vadd.f32 %v1193_v23, %v1180_v25 }
 0x15c   :  { %v1153_v15 = vpop.f32.mrf.mxu2  ;;  %v1167_v16 = vpop.f32.mrf.mxu3 }
 0x15d   :  { %v1154_v18 = vadd.f32 %v1153_v15, %v1140_v14 }
 0x15f   :  { %v1168_v20 = vadd.f32 %v1167_v16, %v1154_v18 }
 0x160   :  { %v1181_v31 = vpop.f32.mrf.mxu0  ;;  %v1195_v35 = vpop.f32.mrf.mxu1 }
 0x161   :  { %v1287_v24 = vmax.f32 %v1168_v20, 0.0  ;;  %v1182_v29 = vadd.f32 %v1181_v31, %v412_v21 }
 0x163   :  { %v1291_v3 = vpack.c.bf16 %v1287_v24, %v1283_v22  ;;  %v1196_v36 = vadd.f32 %v1195_v35, %v1182_v29 }
 0x164   :  { %v1207_v32 = vpop.f32.mrf.mxu2  ;;  %v1221_v26 = vpop.f32.mrf.mxu3 }
 0x165   :  { %1576 = vmatmul.bf16.vlgmr.msrb.gmra.mxu1 %v1291_v3  ;;  %v1208_v33 = vadd.f32 %v1207_v32, %v1194_v28 }
 0x167   :  { %v1222_v39 = vadd.f32 %v1221_v26, %v1208_v33 }
 0x169   :  { %v1284_v43 = vmax.f32 %v1222_v39, 0.0 }
 0x16c   :  { %v1209_v37 = vpop.f32.mrf.mxu2  ;;  %v1223_v41 = vpop.f32.mrf.mxu3 }
 0x16d   :  { %v1210_v40 = vadd.f32 %v1209_v37, %v1196_v36 }
 0x16f   :  { %v1224_v42 = vadd.f32 %v1223_v41, %v1210_v40 }
 0x171   :  { %v1288_v44 = vmax.f32 %v1224_v42, 0.0 }
 0x173   :  { %v1292_v45 = vpack.c.bf16 %v1288_v44, %v1284_v43 }
 0x175   :  { %1590 = vmatmul.bf16.vlgmr.msrb.gmra.mxu2 %v1292_v45 }
 0x178   :  { %v1235_v46 = vpop.f32.mrf.mxu0  ;;  %v1249_v48 = vpop.f32.mrf.mxu1 }
 0x179   :  { %v1236_v49 = vadd.f32 %v1235_v46, %v413_v47 }
 0x17b   :  { %v1250_v53 = vadd.f32 %v1249_v48, %v1236_v49 }
 0x180   :  { %v1237_v50 = vpop.f32.mrf.mxu0  ;;  %v1251_v56 = vpop.f32.mrf.mxu1 }
 0x181   :  { %v1238_v54 = vadd.f32 %v1237_v50, %v413_v47 }
 0x183   :  { %v1252_v57 = vadd.f32 %v1251_v56, %v1238_v54 }
 0x184   :  { %v1263_v51 = vpop.f32.mrf.mxu2  ;;  %v1277_v52 = vpop.f32.mrf.mxu3 }
 0x185   :  { %v1264_v55 = vadd.f32 %v1263_v51, %v1250_v53 }
 0x187   :  { %v1278_v59 = vadd.f32 %v1277_v52, %v1264_v55 }
 0x189   :  { %v1285_v63 = vmax.f32 %v1278_v59, 0.0 }
 0x18c   :  { %v1265_v58 = vpop.f32.mrf.mxu2  ;;  %v1279_v61 = vpop.f32.mrf.mxu3 }
 0x18d   :  { %v1266_v60 = vadd.f32 %v1265_v58, %v1252_v57 }
 0x18f   :  { %v1280_v62 = vadd.f32 %v1279_v61, %v1266_v60 }
 0x191   :  { %v1289_v0 = vmax.f32 %v1280_v62, 0.0 }
 0x193   :  { %v1293_v1 = vpack.c.bf16 %v1289_v0, %v1285_v63 }
 0x195   :  { %1604 = vmatmul.bf16.vlgmr.msrb.gmra.mxu3 %v1293_v1 }
 0x1d2   :  { %v1563_v34 = vpop.f32.mrf.mxu0 }
 0x1d3   :  { %v1564_v7 = vadd.f32 %v2496_v4, %v1563_v34 }
 0x1da   :  { %v1565_v10 = vpop.f32.mrf.mxu0 }
 0x1db   :  { %v1566_v14 = vadd.f32 %v2496_v4, %v1565_v10 }
 0x1e2   :  { %v1577_v5 = vpop.f32.mrf.mxu1 }
 0x1e3   :  { %v1578_v8 = vadd.f32 %v1577_v5, %v1564_v7 }
 0x1ea   :  { %v1579_v13 = vpop.f32.mrf.mxu1 }
 0x1eb   :  { %v1580_v16 = vadd.f32 %v1579_v13, %v1566_v14 }
 0x1f8   :  { %v1591_v6 = vpop.f32.mrf.mxu2 }
 0x1f9   :  { %v1592_v9 = vadd.f32 %v1591_v6, %v1578_v8 }
 0x200   :  { %v1593_v15 = vpop.f32.mrf.mxu2 }
 0x201   :  { %v1594_v17 = vadd.f32 %v1593_v15, %v1580_v16 }
 0x218   :  { %v1605_v11 = vpop.f32.mrf.mxu3 }
 0x219   :  { %v1606_v12 = vadd.f32 %v1605_v11, %v1592_v9 }
 0x21b   :  { %1610 = vst [vmem:[#allocation13] sm:$0xff] %v1606_v12 }
 0x220   :  { %v1607_v18 = vpop.f32.mrf.mxu3 }
 0x221   :  { %v1608_v19 = vadd.f32 %v1607_v18, %v1594_v17 }
 0x223   :  { %1611 = vst [vmem:[#allocation13 + $0x8] sm:$0xff] %v1608_v19 }
 0x224   :  { %1624 = dma.vmem_to_hbm [thread:$0]  %s1617_s9, 256, %s1619_s12, [#allocation4], %s2686_s6, %s2686_s6, %s2687_s13  }
 0x225   :  { %2673 = dma.done.wait [#allocation4], 256  }
 0x226   :  { %2674 = vsyncadd [#allocation4], 4294967040 }
 0x227   :  { %1629 = vsyncpa [#allocation3], 1 }
 0x228   :  { %1630 = vsyncpa [#allocation6], 1 }
 0x229   :  { %1631 = vsyncpa [#allocation9], 1 }
 0x22a   :  { %1632 = vsyncpa [#allocation12], 1 }
 0x22b   :  { %1633 = vsyncpa [#allocation4], 1 }

</bundles_post_ra>
